<compile_context>
chip_gen: v7x
topology: tpu7x:2x2x1
jax: 0.10.0
libtpu: 0.0.40
codegen_flags: <defaults>
</compile_context>

<pallas_src>
import jax
import jax.numpy as jnp
from jax import lax
from jax.experimental import pallas as pl
from jax.experimental.pallas import tpu as pltpu


def transformer_block_kernel(xk_ref, vres_ref, seg_ref,
                             wvo_ref, w1_ref, w2_ref,
                             bias_ref, out_ref):
    E = xk_ref.shape[1]
    F = w1_ref.shape[1]

    xk = xk_ref[...]              # (NS, E)  flattened `keys`
    vres = vres_ref[...]          # (NS, E)  flattened `values` (residual)

    # Packed bias / LayerNorm-parameter tile: one (8, max(E,F)) f32 slab.
    b_att = bias_ref[0:1, 0:E]    # folded attention bias: S*(bv@Wo) + bo
    g1    = bias_ref[1:2, 0:E]    # norm1 gamma
    be1   = bias_ref[2:3, 0:E]    # norm1 beta
    bf1   = bias_ref[3:4, 0:F]    # ffn bias 1
    bf2   = bias_ref[4:5, 0:E]    # ffn bias 2
    g2    = bias_ref[5:6, 0:E]    # norm2 gamma
    be2   = bias_ref[6:7, 0:E]    # norm2 beta

    # ---- Self-attention (faithful to the reference's einsum bug) -----------
    # out[n,q,h,:] = (sum_k softmax)*(sum_s v[n,s,h,:]) = sum_s v[n,s,h,:]
    # seg is the precomputed per-batch 0/1 segment matrix; Wv and Wo are
    # pre-folded into Wvo, so the whole attention block is two small matmuls.
    xk_sum = jnp.dot(seg_ref[...], xk, preferred_element_type=jnp.float32)     # (NS, E)
    att = jnp.dot(xk_sum, wvo_ref[...], preferred_element_type=jnp.float32) + b_att

    def layernorm(x, g, b):
        mu = jnp.mean(x, axis=-1, keepdims=True)
        var = jnp.mean((x - mu) ** 2, axis=-1, keepdims=True)   # biased (PyTorch)
        return (x - mu) * lax.rsqrt(var + 1e-5) * g + b

    # residual + norm1  (dropout == identity)
    x1 = layernorm(att + vres, g1, be1)

    # feed-forward: Linear(E, F) -> ReLU -> Linear(F, E)
    h1 = jnp.dot(x1, w1_ref[...], preferred_element_type=jnp.float32) + bf1
    h1 = jnp.maximum(h1, 0.0)
    ff = jnp.dot(h1, w2_ref[...], preferred_element_type=jnp.float32) + bf2

    # residual + norm2  (dropout == identity)
    out_ref[...] = layernorm(ff + x1, g2, be2)


def pack_params(params, *, batch, seq_len, num_heads):
    """One-time parameter/constant packing (hoisted out of the per-call path)."""
    H = num_heads
    D = params["wv"].shape[0]
    E = H * D
    F = params["w1"].shape[1]
    W = max(E, F)
    S = seq_len
    NS = batch * S

    # Block-diagonal per-head value weight, pre-folded with fc_out:
    wv_bd = jnp.kron(jnp.eye(H, dtype=jnp.float32), params["wv"])        # (E, E)
    wvo = wv_bd @ params["wo"]                                           # (E, E)
    bv_tiled = jnp.tile(params["bv"], (1, H))                            # (1, E)
    b_att = float(S) * (bv_tiled @ params["wo"]) + params["bo"]          # (1, E)

    def pad_row(v, width):
        v = v.reshape(1, -1)
        return jnp.pad(v, ((0, 0), (0, width - v.shape[1])))

    bias_pack = jnp.concatenate([
        pad_row(b_att, W),
        pad_row(params["g1"], W), pad_row(params["be1"], W),
        pad_row(params["bf1"], W), pad_row(params["bf2"], W),
        pad_row(params["g2"], W), pad_row(params["be2"], W),
        jnp.zeros((1, W), jnp.float32)], axis=0)                         # (8, W)

    # Per-batch 0/1 segment matrix (depends only on N, S) — built once here.
    ri = lax.broadcasted_iota(jnp.int32, (NS, NS), 0) // S
    ci = lax.broadcasted_iota(jnp.int32, (NS, NS), 1) // S
    seg = (ri == ci).astype(jnp.float32)                                 # (NS, NS)

    return {
        "seg": seg,
        "wvo": wvo,
        "w1": params["w1"],
        "w2": params["w2"],
        "bias_pack": bias_pack,
    }


def transformer_block(keys, queries, values, packed):
    # `queries` is accepted for signature parity; the reference never uses it.
    del queries
    N, S, E = keys.shape
    NS = N * S

    xk2 = keys.reshape(NS, E)
    vres2 = values.reshape(NS, E)

    vmem = pl.BlockSpec(memory_space=pltpu.MemorySpace.VMEM)

    # No grid: single invocation, whole arrays resident in VMEM, no pipeline
    # double-buffering.  NOTE(v7x): at realistic sizes split NS across a
    # leading "parallel" grid axis (and tile the segment sum per batch) to use
    # both TensorCores and keep the O(NS^2) seg matrix out of VMEM.
    out = pl.pallas_call(
        transformer_block_kernel,
        out_shape=jax.ShapeDtypeStruct((NS, E), jnp.float32),
        in_specs=[vmem] * 7,
        out_specs=vmem,
    )(xk2, vres2, packed["seg"], packed["wvo"], packed["w1"], packed["w2"],
      packed["bias_pack"])

    return out.reshape(N, S, E)


def reference(keys, queries, values, p, num_heads):
    """Pure-JAX re-statement of the (buggy) PyTorch forward, for verification."""
    del queries
    N, S, E = keys.shape
    D = E // num_heads
    xk = keys.reshape(N, S, num_heads, D)
    k = xk @ p["wk"] + p["bk"]
    q = xk @ p["wq"] + p["bq"]
    v = xk @ p["wv"] + p["bv"]
    energy = jnp.einsum('nqhd,nkhd->nhqk', q, k)
    attn = jax.nn.softmax(energy / (E ** 0.5), axis=3)
    out = jnp.einsum('nhqk,nvhd->nqhd', attn, v)
    out = out.reshape(N, S, E) @ p["wo"] + p["bo"]

    def ln(x, g, b):
        mu = x.mean(-1, keepdims=True)
        var = ((x - mu) ** 2).mean(-1, keepdims=True)
        return (x - mu) / jnp.sqrt(var + 1e-5) * g + b

    x1 = ln(out + values, p["g1"], p["be1"])
    ff = jnp.maximum(x1 @ p["w1"] + p["bf1"], 0.0) @ p["w2"] + p["bf2"]
    return ln(ff + x1, p["g2"], p["be2"])


if __name__ == "__main__":
    N, S, E, H, fexp = 2, 8, 32, 4, 4
    D = E // H
    F = E * fexp

    root = jax.random.PRNGKey(0)
    ks = jax.random.split(root, 16)
    init = lambda k, shape: jax.random.normal(k, shape, jnp.float32) * 0.02

    # Linear weights are stored pre-transposed (in_features, out_features), so the
    # kernel computes x @ W + b. LayerNorm uses the PyTorch default init (ones/zeros).
    params = {
        "wk": init(ks[0], (D, D)), "bk": init(ks[1], (1, D)),
        "wq": init(ks[2], (D, D)), "bq": init(ks[3], (1, D)),
        "wv": init(ks[4], (D, D)), "bv": init(ks[5], (1, D)),
        "wo": init(ks[6], (E, E)), "bo": init(ks[7], (1, E)),
        "g1": jnp.ones((1, E), jnp.float32), "be1": jnp.zeros((1, E), jnp.float32),
        "w1": init(ks[8], (E, F)), "bf1": init(ks[9], (1, F)),
        "w2": init(ks[10], (F, E)), "bf2": init(ks[11], (1, E)),
        "g2": jnp.ones((1, E), jnp.float32), "be2": jnp.zeros((1, E), jnp.float32),
    }

    keys_in = jax.random.normal(ks[12], (N, S, E), jnp.float32)
    queries_in = jax.random.normal(ks[13], (N, S, E), jnp.float32)
    values_in = jax.random.normal(ks[14], (N, S, E), jnp.float32)

    # One-time packing (would be cached across forward calls in real use).
    packed = pack_params(params, batch=N, seq_len=S, num_heads=H)
    packed = jax.tree.map(jax.block_until_ready, packed)

    out = transformer_block(keys_in, queries_in, values_in, packed)
    out = jax.block_until_ready(out)

    ref = reference(keys_in, queries_in, values_in, params, num_heads=H)
    err = float(jnp.max(jnp.abs(out - ref)))
    assert jnp.allclose(out, ref, atol=1e-4, rtol=1e-4), f"max abs err = {err}"

    print("KERNEL_OK")
</pallas_src>

<mosaic_0001>
module attributes {stable_mosaic.version = 11 : i64} {
  func.func @transformer_block_kernel(%arg0: memref<16x32xf32, #tpu.memory_space<vmem>>, %arg1: memref<16x32xf32, #tpu.memory_space<vmem>>, %arg2: memref<16x16xf32, #tpu.memory_space<vmem>>, %arg3: memref<32x32xf32, #tpu.memory_space<vmem>>, %arg4: memref<32x128xf32, #tpu.memory_space<vmem>>, %arg5: memref<128x32xf32, #tpu.memory_space<vmem>>, %arg6: memref<8x128xf32, #tpu.memory_space<vmem>>, %arg7: memref<16x32xf32, #tpu.memory_space<vmem>>) attributes {dimension_semantics = [], scalar_prefetch = 0 : i64, scratch_operands = 0 : i64, tpu.core_type = #tpu.core_type<tc>} {
    %c0 = arith.constant 0 : index
    %c0_0 = arith.constant 0 : index
    %0 = vector.load %arg0[%c0, %c0_0] : memref<16x32xf32, #tpu.memory_space<vmem>>, vector<16x32xf32>
    %c0_1 = arith.constant 0 : index
    %c0_2 = arith.constant 0 : index
    %1 = vector.load %arg1[%c0_1, %c0_2] : memref<16x32xf32, #tpu.memory_space<vmem>>, vector<16x32xf32>
    %c0_3 = arith.constant 0 : index
    %c0_4 = arith.constant 0 : index
    %2 = vector.load %arg6[%c0_3, %c0_4] : memref<8x128xf32, #tpu.memory_space<vmem>>, vector<1x32xf32>
    %c1 = arith.constant 1 : index
    %c0_5 = arith.constant 0 : index
    %3 = vector.load %arg6[%c1, %c0_5] : memref<8x128xf32, #tpu.memory_space<vmem>>, vector<1x32xf32>
    %c2 = arith.constant 2 : index
    %c0_6 = arith.constant 0 : index
    %4 = vector.load %arg6[%c2, %c0_6] : memref<8x128xf32, #tpu.memory_space<vmem>>, vector<1x32xf32>
    %c3 = arith.constant 3 : index
    %c0_7 = arith.constant 0 : index
    %5 = vector.load %arg6[%c3, %c0_7] : memref<8x128xf32, #tpu.memory_space<vmem>>, vector<1x128xf32>
    %c4 = arith.constant 4 : index
    %c0_8 = arith.constant 0 : index
    %6 = vector.load %arg6[%c4, %c0_8] : memref<8x128xf32, #tpu.memory_space<vmem>>, vector<1x32xf32>
    %c5 = arith.constant 5 : index
    %c0_9 = arith.constant 0 : index
    %7 = vector.load %arg6[%c5, %c0_9] : memref<8x128xf32, #tpu.memory_space<vmem>>, vector<1x32xf32>
    %c6 = arith.constant 6 : index
    %c0_10 = arith.constant 0 : index
    %8 = vector.load %arg6[%c6, %c0_10] : memref<8x128xf32, #tpu.memory_space<vmem>>, vector<1x32xf32>
    %c0_11 = arith.constant 0 : index
    %c0_12 = arith.constant 0 : index
    %9 = vector.load %arg2[%c0_11, %c0_12] : memref<16x16xf32, #tpu.memory_space<vmem>>, vector<16x16xf32>
    %cst = arith.constant dense<0.000000e+00> : vector<16x32xf32>
    %10 = tpu.matmul %9, %0, %cst {dimension_numbers = #tpu.dot_dimension_numbers<[1], [0], [0], [1], [0, 0, 1, 1], [], []>} : vector<16x16xf32>, vector<16x32xf32>, vector<16x32xf32> -> vector<16x32xf32>
    %c0_13 = arith.constant 0 : index
    %c0_14 = arith.constant 0 : index
    %11 = vector.load %arg3[%c0_13, %c0_14] : memref<32x32xf32, #tpu.memory_space<vmem>>, vector<32x32xf32>
    %cst_15 = arith.constant dense<0.000000e+00> : vector<16x32xf32>
    %12 = tpu.matmul %10, %11, %cst_15 {dimension_numbers = #tpu.dot_dimension_numbers<[1], [0], [0], [1], [0, 0, 1, 1], [], []>} : vector<16x32xf32>, vector<32x32xf32>, vector<16x32xf32> -> vector<16x32xf32>
    %13 = vector.broadcast %2 : vector<1x32xf32> to vector<16x32xf32>
    %14 = arith.addf %12, %13 : vector<16x32xf32>
    %15 = arith.addf %14, %1 : vector<16x32xf32>
    %cst_16 = arith.constant dense<0.000000e+00> : vector<16xf32>
    %16 = vector.multi_reduction <add>, %15, %cst_16 [1] : vector<16x32xf32> to vector<16xf32>
    %17 = vector.shape_cast %16 : vector<16xf32> to vector<16x1xf32>
    %cst_17 = arith.constant 3.200000e+01 : f32
    %18 = vector.broadcast %cst_17 : f32 to vector<16x1xf32>
    %19 = arith.divf %17, %18 : vector<16x1xf32>
    %20 = vector.broadcast %19 : vector<16x1xf32> to vector<16x32xf32>
    %21 = arith.subf %15, %20 : vector<16x32xf32>
    %22 = arith.mulf %21, %21 : vector<16x32xf32>
    %cst_18 = arith.constant dense<0.000000e+00> : vector<16xf32>
    %23 = vector.multi_reduction <add>, %22, %cst_18 [1] : vector<16x32xf32> to vector<16xf32>
    %24 = vector.shape_cast %23 : vector<16xf32> to vector<16x1xf32>
    %cst_19 = arith.constant 3.200000e+01 : f32
    %25 = vector.broadcast %cst_19 : f32 to vector<16x1xf32>
    %26 = arith.divf %24, %25 : vector<16x1xf32>
    %27 = vector.broadcast %19 : vector<16x1xf32> to vector<16x32xf32>
    %28 = arith.subf %15, %27 : vector<16x32xf32>
    %cst_20 = arith.constant 9.99999974E-6 : f32
    %29 = vector.broadcast %cst_20 : f32 to vector<16x1xf32>
    %30 = arith.addf %26, %29 : vector<16x1xf32>
    %31 = math.rsqrt %30 : vector<16x1xf32>
    %32 = vector.broadcast %31 : vector<16x1xf32> to vector<16x32xf32>
    %33 = arith.mulf %28, %32 : vector<16x32xf32>
    %34 = vector.broadcast %3 : vector<1x32xf32> to vector<16x32xf32>
    %35 = arith.mulf %33, %34 : vector<16x32xf32>
    %36 = vector.broadcast %4 : vector<1x32xf32> to vector<16x32xf32>
    %37 = arith.addf %35, %36 : vector<16x32xf32>
    %c0_21 = arith.constant 0 : index
    %c0_22 = arith.constant 0 : index
    %38 = vector.load %arg4[%c0_21, %c0_22] : memref<32x128xf32, #tpu.memory_space<vmem>>, vector<32x128xf32>
    %cst_23 = arith.constant dense<0.000000e+00> : vector<16x128xf32>
    %39 = tpu.matmul %37, %38, %cst_23 {dimension_numbers = #tpu.dot_dimension_numbers<[1], [0], [0], [1], [0, 0, 1, 1], [], []>} : vector<16x32xf32>, vector<32x128xf32>, vector<16x128xf32> -> vector<16x128xf32>
    %40 = vector.broadcast %5 : vector<1x128xf32> to vector<16x128xf32>
    %41 = arith.addf %39, %40 : vector<16x128xf32>
    %cst_24 = arith.constant 0.000000e+00 : f32
    %42 = vector.broadcast %cst_24 : f32 to vector<16x128xf32>
    %43 = arith.maximumf %41, %42 : vector<16x128xf32>
    %c0_25 = arith.constant 0 : index
    %c0_26 = arith.constant 0 : index
    %44 = vector.load %arg5[%c0_25, %c0_26] : memref<128x32xf32, #tpu.memory_space<vmem>>, vector<128x32xf32>
    %cst_27 = arith.constant dense<0.000000e+00> : vector<16x32xf32>
    %45 = tpu.matmul %43, %44, %cst_27 {dimension_numbers = #tpu.dot_dimension_numbers<[1], [0], [0], [1], [0, 0, 1, 1], [], []>} : vector<16x128xf32>, vector<128x32xf32>, vector<16x32xf32> -> vector<16x32xf32>
    %46 = vector.broadcast %6 : vector<1x32xf32> to vector<16x32xf32>
    %47 = arith.addf %45, %46 : vector<16x32xf32>
    %48 = arith.addf %47, %37 : vector<16x32xf32>
    %cst_28 = arith.constant dense<0.000000e+00> : vector<16xf32>
    %49 = vector.multi_reduction <add>, %48, %cst_28 [1] : vector<16x32xf32> to vector<16xf32>
    %50 = vector.shape_cast %49 : vector<16xf32> to vector<16x1xf32>
    %cst_29 = arith.constant 3.200000e+01 : f32
    %51 = vector.broadcast %cst_29 : f32 to vector<16x1xf32>
    %52 = arith.divf %50, %51 : vector<16x1xf32>
    %53 = vector.broadcast %52 : vector<16x1xf32> to vector<16x32xf32>
    %54 = arith.subf %48, %53 : vector<16x32xf32>
    %55 = arith.mulf %54, %54 : vector<16x32xf32>
    %cst_30 = arith.constant dense<0.000000e+00> : vector<16xf32>
    %56 = vector.multi_reduction <add>, %55, %cst_30 [1] : vector<16x32xf32> to vector<16xf32>
    %57 = vector.shape_cast %56 : vector<16xf32> to vector<16x1xf32>
    %cst_31 = arith.constant 3.200000e+01 : f32
    %58 = vector.broadcast %cst_31 : f32 to vector<16x1xf32>
    %59 = arith.divf %57, %58 : vector<16x1xf32>
    %60 = vector.broadcast %52 : vector<16x1xf32> to vector<16x32xf32>
    %61 = arith.subf %48, %60 : vector<16x32xf32>
    %cst_32 = arith.constant 9.99999974E-6 : f32
    %62 = vector.broadcast %cst_32 : f32 to vector<16x1xf32>
    %63 = arith.addf %59, %62 : vector<16x1xf32>
    %64 = math.rsqrt %63 : vector<16x1xf32>
    %65 = vector.broadcast %64 : vector<16x1xf32> to vector<16x32xf32>
    %66 = arith.mulf %61, %65 : vector<16x32xf32>
    %67 = vector.broadcast %7 : vector<1x32xf32> to vector<16x32xf32>
    %68 = arith.mulf %66, %67 : vector<16x32xf32>
    %69 = vector.broadcast %8 : vector<1x32xf32> to vector<16x32xf32>
    %70 = arith.addf %68, %69 : vector<16x32xf32>
    %c0_33 = arith.constant 0 : index
    %c0_34 = arith.constant 0 : index
    %71 = vector.load %arg7[%c0_33, %c0_34] : memref<16x32xf32, #tpu.memory_space<vmem>>, vector<16x32xf32>
    tpu.vector_store %arg7[%c0_33, %c0_34], %70 {strides = array<i32>} : memref<16x32xf32, #tpu.memory_space<vmem>>, vector<16x32xf32>,
    return
  }
}

</mosaic_0001>

<bundles_post_ra>
// kernel: tpu_custom_call.1
= control target key start
LH: loop header
LB: loop body
LE: loop exit
PB: predicated region body
PF: predicated region fallthrough
CT: control target
= control target key end

     0   :  { %vm40_vm0 = vcmask 130048   ;;  %s885_s0 = inlined_call_operand.vmem [shape: f32[16,32], index: 0, kind: input, shape index: {}]   ;;  %s886_s1 = inlined_call_operand.vmem [shape: f32[16,32], index: 1, kind: input, shape index: {}]   ;;  %s887_s2 = inlined_call_operand.vmem [shape: f32[16,16], index: 2, kind: input, shape index: {}]   ;;  %s888_s3 = inlined_call_operand.vmem [shape: f32[32,32], index: 3, kind: input, shape index: {}]   ;;  %s889_s4 = inlined_call_operand.vmem [shape: f32[32,128], index: 4, kind: input, shape index: {}]   ;;  %s890_s5 = inlined_call_operand.vmem [shape: f32[128,32], index: 5, kind: input, shape index: {}]   ;;  %s891_s6 = inlined_call_operand.vmem [shape: f32[8,128], index: 6, kind: input, shape index: {}]   ;;  %s892_s7 = inlined_call_operand.hbm [shape: f32[16,32], index: 7, kind: output, shape index: {}]  }
   0x1   :  { %v27_v0 = vld [vmem:[%s885_s0] sm:$0xff]  ;;  %v28_v1 = vld [vmem:[%s885_s0 + $0x8] sm:$0xff]  ;;  %v124_v7 = vld [vmem:[%s888_s3 + $0x10] sm:$0xff] }
   0x2   :  { %v38_v2 = vld [vmem:[%s887_s2] sm:$0xff]  ;;  %v608_v3 = vpack.c.bf16 %v28_v1, %v27_v0  ;;  %v123_v5 = vld [vmem:[%s888_s3 + $0x8] sm:$0xff]  ;;  %v125_v8 = vld [vmem:[%s888_s3 + $0x18] sm:$0xff] }
   0x3   :  { %548 = vmatprep.mubr.msk.f32.mxu0 %vm40_vm0, %v38_v2  ;;  %v122_v4 = vld [vmem:[%s888_s3] sm:$0xff] }
   0x4   :  { %v612_v6 = vpack.c.bf16 %v123_v5, %v122_v4 }
   0x5   :  { %12 = vsyncpa [#allocation3], 0  ;;  %609 = vmatprep.subr.bf16.mxu0 %v608_v3  ;;  %v39_v9 = vld [vmem:[%s887_s2 + $0x8] sm:$0xff]  ;;  %v616_v10 = vpack.c.bf16 %v125_v8, %v124_v7  ;;  %vm130_vm1 = vcmask 261120   ;;  %v499_v13 = vld [vmem:[%s891_s6] ss:$0 sm:$0xff] }
   0x6   :  { %611 = vmatpush3.bf16.msra.mxu0 %v608_v3  ;;  %v29_v16 = vld [vmem:[%s886_s1] sm:$0xff]  ;;  %v30_v19 = vld [vmem:[%s886_s1 + $0x8] sm:$0xff]  ;;  %v255_v37 = vld [vmem:[%s889_s4 + $0x10] sm:$0xff]  ;;  %s695_s16 = smov [#allocation2]  }
   0x7   :  { %613 = vmatprep.subr.bf16.mxu0 %v612_v6  ;;  %v253_v34 = vld [vmem:[%s889_s4] sm:$0xff]  ;;  %v254_v35 = vld [vmem:[%s889_s4 + $0x8] sm:$0xff]  ;;  %v256_v38 = vld [vmem:[%s889_s4 + $0x18] sm:$0xff]  ;;  %s486_s2 = sshll.u32 %s695_s16, 4  ;;  %s487_s2 = int_to_ptr.vmem [resolvable:$true] %s486_s2 }
   0x8   :  { %v620_v36 = vpack.c.bf16 %v254_v35, %v253_v34  ;;  %v624_v39 = vpack.c.bf16 %v256_v38, %v255_v37  ;;  %v344_v40 = vld [vmem:[%s890_s5] sm:$0xff]  ;;  %v345_v41 = vld [vmem:[%s890_s5 + $0x8] sm:$0xff]  ;;  %v346_v42 = vld [vmem:[%s890_s5 + $0x10] sm:$0xff]  ;;  %s671_s17 = scalar_lea.vmem %s487_s2, 256  ;;  %p676_p1 = scmp.lt.s32.totalorder %s487_s2, %s487_s2 }
   0x9   :  { %549 = vmatmul.mubr.msk.f32.vlgmr.msra.gmra.mrb[0].mxu0 %vm40_vm0, %v39_v9  ;;  %v628_v43 = vpack.c.bf16 %v345_v41, %v344_v40  ;;  %v347_v44 = vld [vmem:[%s890_s5 + $0x18] sm:$0xff]  ;;  %v348_v46 = vld [vmem:[%s890_s5 + $0x20] sm:$0xff]  ;;  %v349_v47 = vld [vmem:[%s890_s5 + $0x28] sm:$0xff]  ;;  %p672_p0 = scmp.ne.s32.totalorder %s487_s2, %s671_s17  ;;  %p677_p2 = scmp.lt.s32.totalorder %s671_s17, %s671_s17 }
   0xa   :  { %615 = vmatpush3.bf16.msra.mxu0 %v612_v6  ;;  %v632_v45 = vpack.c.bf16 %v347_v44, %v346_v42  ;;  %v636_v48 = vpack.c.bf16 %v349_v47, %v348_v46  ;;  %v350_v49 = vld [vmem:[%s890_s5 + $0x30] sm:$0xff]  ;;  %v351_v50 = vld [vmem:[%s890_s5 + $0x38] sm:$0xff]  ;;  %v352_v52 = vld [vmem:[%s890_s5 + $0x40] sm:$0xff] }
   0xb   :  { %617 = vmatprep.subr.bf16.mxu0 %v616_v10  ;;  %629 = vmatprep.subr.bf16.mxu1 %v628_v43  ;;  %v640_v51 = vpack.c.bf16 %v351_v50, %v350_v49  ;;  %v353_v53 = vld [vmem:[%s890_s5 + $0x48] sm:$0xff]  ;;  %v354_v55 = vld [vmem:[%s890_s5 + $0x50] sm:$0xff]  ;;  %v355_v56 = vld [vmem:[%s890_s5 + $0x58] sm:$0xff]  ;;  %p678_p3 = por %p677_p2, %p676_p1 }
   0xc   :  { %631 = vmatpush3.bf16.msra.mxu1 %v628_v43  ;;  %v644_v54 = vpack.c.bf16 %v353_v53, %v352_v52  ;;  %v648_v57 = vpack.c.bf16 %v355_v56, %v354_v55  ;;  %v356_v58 = vld [vmem:[%s890_s5 + $0x60] sm:$0xff]  ;;  %v357_v59 = vld [vmem:[%s890_s5 + $0x68] sm:$0xff] }
   0xd   :  { %633 = vmatprep.subr.bf16.mxu1 %v632_v45  ;;  %v652_v60 = vpack.c.bf16 %v357_v59, %v356_v58  ;;  %v502_v4 = vld [vmem:[%s891_s6 + $0x1] ss:$0 sm:$0xff]  ;;  %v503_v6 = vld [vmem:[%s891_s6 + $0x2] ss:$0 sm:$0xff]  ;;  %v508_v49 = vld [vmem:[%s891_s6 + $0x5] ss:$0 sm:$0xff]  ;;  %p679_p4 = pnand %p678_p3, %p672_p0 }
   0xe   :  { %619 = vmatpush3.bf16.msra.mxu0 %v616_v10  ;;  %v509_v53 = vld [vmem:[%s891_s6 + $0x6] ss:$0 sm:$0xff] }
   0xf   :  { %621 = vmatprep.subr.bf16.mxu0 %v620_v36 }
  0x10   :  { %635 = vmatpush3.bf16.msra.mxu1 %v632_v45 }
  0x11   :  { %637 = vmatprep.subr.bf16.mxu1 %v636_v48 }
  0x14   :  { %639 = vmatpush3.bf16.msra.mxu1 %v636_v48 }
  0x15   :  { %641 = vmatprep.subr.bf16.mxu1 %v640_v51 }
  0x18   :  { %643 = vmatpush3.bf16.msra.mxu1 %v640_v51 }
  0x19   :  { %645 = vmatprep.subr.bf16.mxu1 %v644_v54 }
  0x1c   :  { %647 = vmatpush3.bf16.msra.mxu1 %v644_v54 }
  0x1d   :  { %649 = vmatprep.subr.bf16.mxu1 %v648_v57 }
  0x20   :  { %651 = vmatpush3.bf16.msra.mxu1 %v648_v57 }
  0x21   :  { %653 = vmatprep.subr.bf16.mxu1 %v652_v60 }
  0x24   :  { %655 = vmatpush3.bf16.msra.mxu1 %v652_v60 }
  0xdc   :  { %v550_v11 = vpop.f32.mrb[0].mxu0 }
  0xdd   :  { %v113_v12 = vpop.f32.mrb[1].mxu0 }
  0xde   :  { %559 = vmatprep.mubr.msk.f32.mxu0 %vm130_vm1, %v113_v12 }
  0xdf   :  { %560 = vmatmul.mubr.msk.f32.vlgmr.msra.gmra.mrb[2].mxu0 %vm130_vm1, %v550_v11 }
  0xe0   :  { %623 = vmatpush3.bf16.msra.mxu0 %v620_v36 }
  0xe1   :  { %625 = vmatprep.subr.bf16.mxu0 %v624_v39 }
  0xe4   :  { %627 = vmatpush3.bf16.msra.mxu0 %v624_v39 }
 0x1b2   :  { %v561_v14 = vpop.f32.mrb[2].mxu0 }
 0x1b3   :  { %v203_v15 = vpop.f32.mrb[3].mxu0  ;;  %v209_v17 = vadd.f32 %v561_v14, %v499_v13  ;;  %v359_v14 = vld [vmem:[%s890_s5 + $0x78] sm:$0xff] }
 0x1b4   :  { %v204_v18 = vadd.f32 %v499_v13, %v203_v15  ;;  %v358_v13 = vld [vmem:[%s890_s5 + $0x70] sm:$0xff] }
 0x1b5   :  { %v213_v22 = vadd.f32 %v209_v17, %v30_v19  ;;  %v656_v15 = vpack.c.bf16 %v359_v14, %v358_v13 }
 0x1b6   :  { %v212_v20 = vadd.f32 %v204_v18, %v29_v16  ;;  %v504_v16 = vld [vmem:[%s891_s6 + $0x3] ss:$0 sm:$0xff] }
 0x1b7   :  { %v217_v23 = vsel %vm130_vm1, %v213_v22, 0.0  ;;  %657 = vmatprep.subr.bf16.mxu1 %v656_v15 }
 0x1b8   :  { %v214_v21 = vsel %vm130_vm1, %v212_v20, 0.0  ;;  %659 = vmatpush3.bf16.msra.mxu1 %v656_v15 }
 0x1b9   :  { %215 = vadd.xlane.f32.xlu0 %v214_v21 }
 0x1bd   :  { %218 = vadd.xlane.f32.xlu0 %v217_v23  ;;  %v507_v23 = vld [vmem:[%s891_s6 + $0x4] ss:$0 sm:$0xff] }
 0x246   :  { %v216_v24 = vpop.xlane.xlu0 %215 }
 0x247   :  { %v221_v25 = vmul.f32 0.03125, %v216_v24 }
 0x249   :  { %v775_v26 = vsub.f32 %v212_v20, %v221_v25 }
 0x24a   :  { %v219_v27 = vpop.xlane.xlu0 %218 }
 0x24b   :  { %v222_v28 = vmul.f32 0.03125, %v219_v27  ;;  %v225_v29 = vmul.f32 %v775_v26, %v775_v26 }
 0x24d   :  { %v779_v30 = vsub.f32 %v213_v22, %v222_v28  ;;  %v227_v31 = vsel %vm130_vm1, %v225_v29, 0.0 }
 0x24e   :  { %228 = vadd.xlane.f32.xlu1 %v227_v31 }
 0x24f   :  { %v226_v32 = vmul.f32 %v779_v30, %v779_v30 }
 0x251   :  { %v230_v33 = vsel %vm130_vm1, %v226_v32, 0.0 }
 0x252   :  { %231 = vadd.xlane.f32.xlu1 %v230_v33 }
 0x2db   :  { %v229_v61 = vpop.xlane.xlu1 %228 }
 0x2dc   :  { %v233_v62 = vmul.f32 0.03125, %v229_v61 }
 0x2de   :  { %v235_v63 = vadd.f32 1e-05, %v233_v62 }
 0x2df   :  { %v232_v0 = vpop.xlane.xlu1 %231 }
 0x2e0   :  { %663 = vrsqrt.f32 %v235_v63  ;;  %v234_v1 = vmul.f32 0.03125, %v232_v0 }
 0x2e2   :  { %v236_v2 = vadd.f32 1e-05, %v234_v1 }
 0x2e4   :  { %665 = vrsqrt.f32 %v236_v2 }
 0x2ea   :  { %v664_v3 = vpop.eup %663 }
 0x2eb   :  { %v239_v5 = vmul.f32 %v664_v3, %v775_v26 }
 0x2ed   :  { %v245_v7 = vmul.f32 %v502_v4, %v239_v5 }
 0x2ee   :  { %v666_v8 = vpop.eup %665 }
 0x2ef   :  { %v240_v9 = vmul.f32 %v666_v8, %v779_v30  ;;  %v251_v10 = vadd.f32 %v503_v6, %v245_v7 }
 0x2f1   :  { %v246_v11 = vmul.f32 %v502_v4, %v240_v9  ;;  %570 = vmatprep.mubr.msk.f32.mxu0 %vm130_vm1, %v251_v10 }
 0x2f3   :  { %v252_v12 = vadd.f32 %v503_v6, %v246_v11 }
 0x2f5   :  { %571 = vmatmul.mubr.msk.f32.vlgmr.msra.gmra.mrb[4].mxu0 %vm130_vm1, %v252_v12 }
 0x3c8   :  { %v572_v17 = vpop.f32.mrb[4].mxu0 }
 0x3c9   :  { %v339_v18 = vadd.f32 %v572_v17, %v504_v16  ;;  %v333_v19 = vpop.f32.mrb[5].mxu0 }
 0x3ca   :  { %v334_v20 = vadd.f32 %v504_v16, %v333_v19 }
 0x3cb   :  { %v343_v22 = vmax.f32 %v339_v18, 0.0 }
 0x3cc   :  { %v342_v21 = vmax.f32 %v334_v20, 0.0 }
 0x3ce   :  { %605 = vmatprep.mubr.f32.mxu1 %v342_v21 }
 0x3cf   :  { %606 = vmatmul.mubr.f32.vlgmr.msra.gmra.mrb[0].mxu1 %v343_v22 }
 0x4a2   :  { %v607_v24 = vpop.f32.mrb[0].mxu1 }
 0x4a3   :  { %v436_v25 = vadd.f32 %v607_v24, %v507_v23  ;;  %v430_v26 = vpop.f32.mrb[1].mxu1 }
 0x4a4   :  { %v431_v27 = vadd.f32 %v507_v23, %v430_v26 }
 0x4a5   :  { %v440_v28 = vadd.f32 %v436_v25, %v252_v12 }
 0x4a6   :  { %v439_v29 = vadd.f32 %v431_v27, %v251_v10 }
 0x4a7   :  { %v444_v30 = vsel %vm130_vm1, %v440_v28, 0.0 }
 0x4a8   :  { %445 = vadd.xlane.f32.xlu1 %v444_v30  ;;  %v441_v31 = vsel %vm130_vm1, %v439_v29, 0.0 }
 0x4a9   :  { %442 = vadd.xlane.f32.xlu0 %v441_v31 }
 0x535   :  { %v446_v32 = vpop.xlane.xlu1 %445 }
 0x536   :  { %v448_v33 = vmul.f32 0.03125, %v446_v32  ;;  %v443_v34 = vpop.xlane.xlu0 %442 }
 0x537   :  { %v447_v35 = vmul.f32 0.03125, %v443_v34 }
 0x538   :  { %v450_v36 = vsub.f32 %v440_v28, %v448_v33 }
 0x539   :  { %v449_v37 = vsub.f32 %v439_v29, %v447_v35 }
 0x53a   :  { %v452_v38 = vmul.f32 %v450_v36, %v450_v36 }
 0x53b   :  { %v451_v39 = vmul.f32 %v449_v37, %v449_v37 }
 0x53c   :  { %v456_v40 = vsel %vm130_vm1, %v452_v38, 0.0 }
 0x53d   :  { %457 = vadd.xlane.f32.xlu1 %v456_v40  ;;  %v453_v41 = vsel %vm130_vm1, %v451_v39, 0.0 }
 0x53e   :  { %454 = vadd.xlane.f32.xlu0 %v453_v41 }
 0x5ca   :  { %v458_v42 = vpop.xlane.xlu1 %457 }
 0x5cb   :  { %v460_v43 = vmul.f32 0.03125, %v458_v42  ;;  %v455_v44 = vpop.xlane.xlu0 %454 }
 0x5cc   :  { %v459_v45 = vmul.f32 0.03125, %v455_v44 }
 0x5cd   :  { %v462_v46 = vadd.f32 1e-05, %v460_v43 }
 0x5ce   :  { %v461_v47 = vadd.f32 1e-05, %v459_v45 }
 0x5cf   :  { %667 = vrsqrt.f32 %v462_v46 }
 0x5d0   :  { %669 = vrsqrt.f32 %v461_v47 }
 0x5d9   :  { %v668_v48 = vpop.eup %667 }
 0x5da   :  { %v670_v50 = vpop.eup %669  ;;  %v466_v51 = vmul.f32 %v668_v48, %v450_v36 }
 0x5db   :  { %v465_v52 = vmul.f32 %v670_v50, %v449_v37 }
 0x5dc   :  { %v472_v54 = vmul.f32 %v508_v49, %v466_v51 }
 0x5dd   :  { %v471_v55 = vmul.f32 %v508_v49, %v465_v52 }
 0x5de   :  { %v478_v56 = vadd.f32 %v509_v53, %v472_v54 }
 0x5df   :  { %v477_v57 = vadd.f32 %v509_v53, %v471_v55 }
 0x5e0   :  { %480 = vst.msk [vmem:[#allocation2 + $0x8] sm:$0xff] %vm130_vm1, %v478_v56 }
 0x5e1   :  { %479 = vst.msk [vmem:[#allocation2] sm:$0xff] %vm130_vm1, %v477_v57 }
 0x5e2   :  { %682 = shalt.err (!%p679_p4)
}
 0x5e3   :  { %s683_s19 = scalar_lea.hbm %s892_s7, 256 }
 0x5e4   :  { %p684_p5 = scmp.ne.s32.totalorder %s892_s7, %s683_s19  ;;  %p687_p6 = scmp.lt.u32.totalorder %s683_s19, %s892_s7 }
 0x5e6   :  { %p689_p7 = pnand %p687_p6, %p684_p5 }
 0x5e8   :  { %692 = shalt.err (!%p689_p7)
}
 0x5e9   :  { %s696_s23 = smov 128   ;;  %s697_s24 = smov 8  }
 0x5ea   :  { %492 = dma.vmem_to_hbm [thread:$0]  %s487_s2, 256, %s892_s7, [#allocation3], %s696_s23, %s696_s23, %s697_s24  }
 0x5eb   :  { %693 = dma.done.wait [#allocation3], 256  }
 0x5ec   :  { %694 = vsyncadd [#allocation3], 4294967040 }
 0x5ed   :  { %496 = vsyncpa [#allocation3], 1 }

</bundles_post_ra>
